<compile_context>
chip_gen: v7x
topology: tpu7x:2x2x1
jax: 0.10.0
libtpu: 0.0.40
codegen_flags: <defaults>
</compile_context>

<pallas_src>
import jax
import jax.numpy as jnp
from jax.experimental import pallas as pl
from jax.experimental.pallas import tpu as pltpu


def _round_up(v, m):
    return (v + m - 1) // m * m


# ----------------------------------------------------------------------------
# Kernel: one (Bt, C, HW) batch block per grid step.
# ----------------------------------------------------------------------------
def _context_block_kernel(x_ref, wm_ref, w1_ref, b1_ref, g_ref, be_ref,
                          w2_ref, b2_ref, o_ref):
    Bt, C, HW = x_ref.shape
    P = w1_ref.shape[0]

    # ---------------- context modeling ('att'), batched over Bt --------------
    # logits[b, l] = sum_c w_mask[c] * x[b, c, l]   (batched MXU matmul, M=1)
    wm_b = jnp.broadcast_to(wm_ref[...][None], (Bt, 1, C))
    logits = jnp.einsum("boc,bcl->bol", wm_b, x_ref[...],
                        preferred_element_type=jnp.float32).reshape(Bt, HW)
    # conv_mask.bias adds one scalar to every spatial logit; softmax is
    # shift-invariant, so it is provably a no-op and is dropped.
    m = jnp.max(logits, axis=-1, keepdims=True)                   # (Bt, 1)
    e = jnp.exp(logits - m)                                       # (Bt, HW)
    inv = pl.reciprocal(jnp.sum(e, axis=-1, keepdims=True))       # (Bt, 1)
    # unnormalized context: ctx[b, c] = sum_l x[b, c, l] * e[b, l]  (MXU, N=1)
    ctx = jnp.einsum("bcl,bol->bco", x_ref[...], e.reshape(Bt, 1, HW),
                     preferred_element_type=jnp.float32).reshape(Bt, C)
    ctx = ctx * inv                      # softmax denominator folded in here

    # ------ transform: conv1x1 C->P, LayerNorm([P,1,1]), ReLU, conv1x1 P->C --
    h = jnp.einsum("bc,pc->bp", ctx, w1_ref[...],
                   preferred_element_type=jnp.float32) + b1_ref[...]   # (Bt, P)
    mu = jnp.mean(h, axis=-1, keepdims=True)
    var = jnp.mean((h - mu) ** 2, axis=-1, keepdims=True)               # biased
    hn = (h - mu) * jax.lax.rsqrt(var + 1e-5)
    hn = hn * g_ref[...] + be_ref[...]
    hr = jnp.maximum(hn, 0.0)                                           # ReLU
    term = jnp.einsum("bp,cp->bc", hr, w2_ref[...],
                      preferred_element_type=jnp.float32) + b2_ref[...]  # (Bt, C)

    # ---------------- fusion ('add'): lane-dense full-block writeback --------
    o_ref[...] = (x_ref[...] + term[:, :, None]).astype(o_ref.dtype)


# ----------------------------------------------------------------------------
# Wrapper
# ----------------------------------------------------------------------------
def _tpu_budgets():
    """Generation-aware (block_budget_bytes, vmem_limit_bytes, small_vmem)."""
    try:
        vmem_cap = int(getattr(pltpu.get_tpu_info(), "vmem_capacity_bytes",
                               128 * 1024 * 1024))
    except Exception:  # non-TPU trace / AOT fallback
        vmem_cap = 128 * 1024 * 1024
    small_vmem = vmem_cap <= 80 * 1024 * 1024        # v7x-class: 64 MiB, 2 TCs
    block_budget = (6 if small_vmem else 12) * 1024 * 1024
    vmem_limit = (44 if small_vmem else 64) * 1024 * 1024
    return block_budget, vmem_limit, small_vmem


def _pick_bt(B, cap):
    """Largest batch block <= cap; pad B only when divisors are poor."""
    cap = max(1, min(cap, B))
    bt = max(d for d in range(1, cap + 1) if B % d == 0)
    if 2 * bt >= cap:
        return bt, B                     # good divisor, no batch padding
    return cap, _round_up(B, cap)        # awkward B: pad up to a multiple


@jax.jit
def context_block(x, params):
    """ContextBlock('att', 'add', with_layernorm=True) forward pass."""
    B, C, H, W = x.shape
    HW = H * W
    P = params["w1"].shape[0]
    itemsize = jnp.dtype(x.dtype).itemsize

    # ---- generation-aware batch blocking (footprint uses padded VMEM tiles) -
    sub = {4: 8, 2: 16, 1: 32}.get(itemsize, 8)
    img_bytes = _round_up(C, sub) * _round_up(HW, 128) * itemsize
    block_budget, vmem_limit, two_cores = _tpu_budgets()
    cap = max(1, min(B, block_budget // max(1, img_bytes)))
    if two_cores and B >= 2:
        cap = max(1, min(cap, B // 2))   # >= 2 grid steps so both TCs get work
    Bt, Bpad = _pick_bt(B, cap)

    # ---- tiny lane-dense f32 parameters (separate inputs, no in-kernel slicing)
    f32 = jnp.float32
    wm = params["w_mask"].reshape(1, C).astype(f32)
    w1 = params["w1"].reshape(P, C).astype(f32)
    b1 = params["b1"].reshape(1, P).astype(f32)
    g = params["ln_gamma"].reshape(1, P).astype(f32)
    be = params["ln_beta"].reshape(1, P).astype(f32)
    w2 = params["w2"].reshape(C, P).astype(f32)
    b2 = params["b2"].reshape(1, C).astype(f32)
    # conv_mask.bias (b_mask) dropped: softmax is shift-invariant.

    # ---- activations passed unpadded (full-extent trailing block dims) ------
    x2 = x.reshape(B, C, HW)
    if Bpad != B:
        x2 = jnp.pad(x2, ((0, Bpad - B), (0, 0), (0, 0)))   # zero images: benign

    out = pl.pallas_call(
        _context_block_kernel,
        out_shape=jax.ShapeDtypeStruct((Bpad, C, HW), x.dtype),
        grid_spec=pltpu.PrefetchScalarGridSpec(
            num_scalar_prefetch=0,
            grid=(Bpad // Bt,),
            in_specs=[
                pl.BlockSpec((Bt, C, HW), lambda i: (i, 0, 0)),   # x
                pl.BlockSpec((1, C), lambda i: (0, 0)),           # w_mask
                pl.BlockSpec((P, C), lambda i: (0, 0)),           # w1
                pl.BlockSpec((1, P), lambda i: (0, 0)),           # b1
                pl.BlockSpec((1, P), lambda i: (0, 0)),           # ln_gamma
                pl.BlockSpec((1, P), lambda i: (0, 0)),           # ln_beta
                pl.BlockSpec((C, P), lambda i: (0, 0)),           # w2
                pl.BlockSpec((1, C), lambda i: (0, 0)),           # b2
            ],
            out_specs=pl.BlockSpec((Bt, C, HW), lambda i: (i, 0, 0)),
        ),
        compiler_params=pltpu.CompilerParams(
            # Batch-block axis is embarrassingly parallel (shards across the
            # two TensorCores on v7x-class parts).
            dimension_semantics=("parallel",),
            vmem_limit_bytes=int(vmem_limit),
        ),
    )(x2, wm, w1, b1, g, be, w2, b2)

    if Bpad != B:
        out = out[:B]
    return out.reshape(B, C, H, W)


# ----------------------------------------------------------------------------
# Pure-JAX reference and test harness
# ----------------------------------------------------------------------------
def ref_forward(x, params):
    """Pure-JAX reference of ContextBlock('att', 'add', with_layernorm=True)."""
    B, C, H, W = x.shape
    P = params["w1"].shape[0]
    hp = jax.lax.Precision.HIGHEST
    xf = x.reshape(B, C, H * W).astype(jnp.float32)
    logits = jnp.einsum("c,bcl->bl", params["w_mask"].reshape(C), xf,
                        precision=hp) + params["b_mask"][0]
    p = jax.nn.softmax(logits, axis=-1)                        # (B, HW)
    ctx = jnp.einsum("bcl,bl->bc", xf, p, precision=hp)        # (B, C)
    h = jnp.einsum("pc,bc->bp", params["w1"].reshape(P, C), ctx,
                   precision=hp) + params["b1"]                # (B, P)
    mu = h.mean(-1, keepdims=True)
    var = ((h - mu) ** 2).mean(-1, keepdims=True)
    hn = (h - mu) / jnp.sqrt(var + 1e-5)
    hn = hn * params["ln_gamma"] + params["ln_beta"]
    hr = jnp.maximum(hn, 0.0)
    term = jnp.einsum("cp,bp->bc", params["w2"].reshape(C, P), hr,
                      precision=hp) + params["b2"]             # (B, C)
    return x + term[:, :, None, None].astype(x.dtype)


def _make_params(key, C, P):
    ks = jax.random.split(key, 8)
    # NOTE: reset_parameters() zero-inits the last conv (output == input); we
    # use small random values so the full compute path is exercised.
    return {
        "w_mask":   0.1 * jax.random.normal(ks[0], (1, C, 1, 1), jnp.float32),
        "b_mask":   0.3 + 0.1 * jax.random.normal(ks[1], (1,), jnp.float32),
        "w1":       0.1 * jax.random.normal(ks[2], (P, C, 1, 1), jnp.float32),
        "b1":       0.1 * jax.random.normal(ks[3], (P,), jnp.float32),
        "ln_gamma": 1.0 + 0.1 * jax.random.normal(ks[4], (P,), jnp.float32),
        "ln_beta":  0.1 * jax.random.normal(ks[5], (P,), jnp.float32),
        "w2":       0.1 * jax.random.normal(ks[6], (C, P, 1, 1), jnp.float32),
        "b2":       0.1 * jax.random.normal(ks[7], (C,), jnp.float32),
    }


if __name__ == "__main__":
    key = jax.random.PRNGKey(0)

    # (B, C, H, W, ratio): an aligned case, an odd-shaped case exercising
    # unaligned C / HW and multi-image blocks, and a tiny HW<128 / odd-B case.
    cases = [
        (2, 32, 16, 16, 0.25),
        (16, 20, 12, 12, 0.25),
        (3, 16, 8, 8, 0.5),
    ]
    for idx, (B, C, H, W, ratio) in enumerate(cases):
        key, kx, kp = jax.random.split(key, 3)
        P = int(C * ratio)
        x = jax.random.normal(kx, (B, C, H, W), dtype=jnp.float32)
        params = _make_params(kp, C, P)

        out = jax.block_until_ready(context_block(x, params))
        ref = jax.block_until_ready(ref_forward(x, params))

        assert out.shape == x.shape
        err = float(jnp.max(jnp.abs(out - ref)))
        # Tolerance allows for in-kernel MXU f32 matmul precision vs the
        # HIGHEST-precision XLA reference.
        assert err < 2e-3, f"case {idx}: max abs err {err}"

    print("KERNEL_OK")
</pallas_src>

<mosaic_0001>
module attributes {stable_mosaic.version = 11 : i64} {
  func.func @_context_block_kernel(%arg0: i32, %arg1: memref<2x32x256xf32, #tpu.memory_space<vmem>>, %arg2: memref<1x32xf32, #tpu.memory_space<vmem>>, %arg3: memref<8x32xf32, #tpu.memory_space<vmem>>, %arg4: memref<1x8xf32, #tpu.memory_space<vmem>>, %arg5: memref<1x8xf32, #tpu.memory_space<vmem>>, %arg6: memref<1x8xf32, #tpu.memory_space<vmem>>, %arg7: memref<32x8xf32, #tpu.memory_space<vmem>>, %arg8: memref<1x32xf32, #tpu.memory_space<vmem>>, %arg9: memref<2x32x256xf32, #tpu.memory_space<vmem>>) attributes {dimension_semantics = [#tpu.dimension_semantics<parallel>], iteration_bounds = array<i64: 1>, scalar_prefetch = 0 : i64, scratch_operands = 0 : i64, tpu.core_type = #tpu.core_type<tc>, window_params = [{transform_indices = @transform_0, window_bounds = array<i64: 2, 32, 256>}, {pipeline_mode = #tpu.pipeline_mode<synchronous>, transform_indices = @transform_1, window_bounds = array<i64: 1, 32>}, {pipeline_mode = #tpu.pipeline_mode<synchronous>, transform_indices = @transform_2, window_bounds = array<i64: 8, 32>}, {pipeline_mode = #tpu.pipeline_mode<synchronous>, transform_indices = @transform_3, window_bounds = array<i64: 1, 8>}, {pipeline_mode = #tpu.pipeline_mode<synchronous>, transform_indices = @transform_4, window_bounds = array<i64: 1, 8>}, {pipeline_mode = #tpu.pipeline_mode<synchronous>, transform_indices = @transform_5, window_bounds = array<i64: 1, 8>}, {pipeline_mode = #tpu.pipeline_mode<synchronous>, transform_indices = @transform_6, window_bounds = array<i64: 32, 8>}, {pipeline_mode = #tpu.pipeline_mode<synchronous>, transform_indices = @transform_7, window_bounds = array<i64: 1, 32>}, {transform_indices = @transform_8, window_bounds = array<i64: 2, 32, 256>}]} {
    %c0 = arith.constant 0 : index
    %c0_0 = arith.constant 0 : index
    %0 = vector.load %arg2[%c0, %c0_0] : memref<1x32xf32, #tpu.memory_space<vmem>>, vector<1x32xf32>
    %1 = vector.shape_cast %0 : vector<1x32xf32> to vector<1x1x32xf32>
    %2 = vector.shape_cast %1 : vector<1x1x32xf32> to vector<1x1x32xf32>
    %3 = vector.broadcast %2 : vector<1x1x32xf32> to vector<2x1x32xf32>
    %c0_1 = arith.constant 0 : index
    %c0_2 = arith.constant 0 : index
    %c0_3 = arith.constant 0 : index
    %4 = vector.load %arg1[%c0_1, %c0_2, %c0_3] : memref<2x32x256xf32, #tpu.memory_space<vmem>>, vector<2x32x256xf32>
    "tpu.trace_start"() <{level = 10 : i32, message = "boc,bcl->bol"}> : () -> ()
    %cst = arith.constant dense<0.000000e+00> : vector<2x1x256xf32>
    %5 = tpu.matmul %3, %4, %cst {dimension_numbers = #tpu.dot_dimension_numbers<[2], [1], [1], [2], [0, 0, 0, 1, 1, 2], [0], [0]>} : vector<2x1x32xf32>, vector<2x32x256xf32>, vector<2x1x256xf32> -> vector<2x1x256xf32>
    "tpu.trace_stop"() : () -> ()
    %6 = vector.shape_cast %5 : vector<2x1x256xf32> to vector<2x256xf32>
    %cst_4 = arith.constant dense<0xFF800000> : vector<2xf32>
    %7 = vector.multi_reduction <maximumf>, %6, %cst_4 [1] : vector<2x256xf32> to vector<2xf32>
    %8 = vector.shape_cast %7 : vector<2xf32> to vector<2x1xf32>
    %9 = vector.broadcast %8 : vector<2x1xf32> to vector<2x256xf32>
    %10 = arith.subf %6, %9 : vector<2x256xf32>
    %11 = math.exp %10 : vector<2x256xf32>
    %cst_5 = arith.constant dense<0.000000e+00> : vector<2xf32>
    %12 = vector.multi_reduction <add>, %11, %cst_5 [1] : vector<2x256xf32> to vector<2xf32>
    %13 = vector.shape_cast %12 : vector<2xf32> to vector<2x1xf32>
    %14 = tpu.reciprocal %13 : vector<2x1xf32> -> vector<2x1xf32>
    %c0_6 = arith.constant 0 : index
    %c0_7 = arith.constant 0 : index
    %c0_8 = arith.constant 0 : index
    %15 = vector.load %arg1[%c0_6, %c0_7, %c0_8] : memref<2x32x256xf32, #tpu.memory_space<vmem>>, vector<2x32x256xf32>
    %16 = vector.shape_cast %11 : vector<2x256xf32> to vector<2x1x256xf32>
    "tpu.trace_start"() <{level = 10 : i32, message = "bcl,bol->bco"}> : () -> ()
    %cst_9 = arith.constant dense<0.000000e+00> : vector<2x32x1xf32>
    %17 = tpu.matmul %15, %16, %cst_9 {dimension_numbers = #tpu.dot_dimension_numbers<[2], [2], [1], [1], [0, 0, 0, 1, 1, 1], [0], [0]>} : vector<2x32x256xf32>, vector<2x1x256xf32>, vector<2x32x1xf32> -> vector<2x32x1xf32>
    "tpu.trace_stop"() : () -> ()
    %18 = vector.shape_cast %17 : vector<2x32x1xf32> to vector<2x32xf32>
    %19 = vector.broadcast %14 : vector<2x1xf32> to vector<2x32xf32>
    %20 = arith.mulf %18, %19 : vector<2x32xf32>
    %c0_10 = arith.constant 0 : index
    %c0_11 = arith.constant 0 : index
    %21 = vector.load %arg3[%c0_10, %c0_11] : memref<8x32xf32, #tpu.memory_space<vmem>>, vector<8x32xf32>
    "tpu.trace_start"() <{level = 10 : i32, message = "bc,pc->bp"}> : () -> ()
    %cst_12 = arith.constant dense<0.000000e+00> : vector<2x8xf32>
    %22 = tpu.matmul %20, %21, %cst_12 {dimension_numbers = #tpu.dot_dimension_numbers<[1], [1], [0], [0], [0, 0, 1, 0], [], []>} : vector<2x32xf32>, vector<8x32xf32>, vector<2x8xf32> -> vector<2x8xf32>
    "tpu.trace_stop"() : () -> ()
    %c0_13 = arith.constant 0 : index
    %c0_14 = arith.constant 0 : index
    %23 = vector.load %arg4[%c0_13, %c0_14] : memref<1x8xf32, #tpu.memory_space<vmem>>, vector<1x8xf32>
    %24 = vector.broadcast %23 : vector<1x8xf32> to vector<2x8xf32>
    %25 = arith.addf %22, %24 : vector<2x8xf32>
    %cst_15 = arith.constant dense<0.000000e+00> : vector<2xf32>
    %26 = vector.multi_reduction <add>, %25, %cst_15 [1] : vector<2x8xf32> to vector<2xf32>
    %27 = vector.shape_cast %26 : vector<2xf32> to vector<2x1xf32>
    %cst_16 = arith.constant 8.000000e+00 : f32
    %28 = vector.broadcast %cst_16 : f32 to vector<2x1xf32>
    %29 = arith.divf %27, %28 : vector<2x1xf32>
    %30 = vector.broadcast %29 : vector<2x1xf32> to vector<2x8xf32>
    %31 = arith.subf %25, %30 : vector<2x8xf32>
    %32 = arith.mulf %31, %31 : vector<2x8xf32>
    %cst_17 = arith.constant dense<0.000000e+00> : vector<2xf32>
    %33 = vector.multi_reduction <add>, %32, %cst_17 [1] : vector<2x8xf32> to vector<2xf32>
    %34 = vector.shape_cast %33 : vector<2xf32> to vector<2x1xf32>
    %cst_18 = arith.constant 8.000000e+00 : f32
    %35 = vector.broadcast %cst_18 : f32 to vector<2x1xf32>
    %36 = arith.divf %34, %35 : vector<2x1xf32>
    %37 = vector.broadcast %29 : vector<2x1xf32> to vector<2x8xf32>
    %38 = arith.subf %25, %37 : vector<2x8xf32>
    %cst_19 = arith.constant 9.99999974E-6 : f32
    %39 = vector.broadcast %cst_19 : f32 to vector<2x1xf32>
    %40 = arith.addf %36, %39 : vector<2x1xf32>
    %41 = math.rsqrt %40 : vector<2x1xf32>
    %42 = vector.broadcast %41 : vector<2x1xf32> to vector<2x8xf32>
    %43 = arith.mulf %38, %42 : vector<2x8xf32>
    %c0_20 = arith.constant 0 : index
    %c0_21 = arith.constant 0 : index
    %44 = vector.load %arg5[%c0_20, %c0_21] : memref<1x8xf32, #tpu.memory_space<vmem>>, vector<1x8xf32>
    %45 = vector.broadcast %44 : vector<1x8xf32> to vector<2x8xf32>
    %46 = arith.mulf %43, %45 : vector<2x8xf32>
    %c0_22 = arith.constant 0 : index
    %c0_23 = arith.constant 0 : index
    %47 = vector.load %arg6[%c0_22, %c0_23] : memref<1x8xf32, #tpu.memory_space<vmem>>, vector<1x8xf32>
    %48 = vector.broadcast %47 : vector<1x8xf32> to vector<2x8xf32>
    %49 = arith.addf %46, %48 : vector<2x8xf32>
    %cst_24 = arith.constant 0.000000e+00 : f32
    %50 = vector.broadcast %cst_24 : f32 to vector<2x8xf32>
    %51 = arith.maximumf %49, %50 : vector<2x8xf32>
    %c0_25 = arith.constant 0 : index
    %c0_26 = arith.constant 0 : index
    %52 = vector.load %arg7[%c0_25, %c0_26] : memref<32x8xf32, #tpu.memory_space<vmem>>, vector<32x8xf32>
    "tpu.trace_start"() <{level = 10 : i32, message = "bp,cp->bc"}> : () -> ()
    %cst_27 = arith.constant dense<0.000000e+00> : vector<2x32xf32>
    %53 = tpu.matmul %51, %52, %cst_27 {dimension_numbers = #tpu.dot_dimension_numbers<[1], [1], [0], [0], [0, 0, 1, 0], [], []>} : vector<2x8xf32>, vector<32x8xf32>, vector<2x32xf32> -> vector<2x32xf32>
    "tpu.trace_stop"() : () -> ()
    %c0_28 = arith.constant 0 : index
    %c0_29 = arith.constant 0 : index
    %54 = vector.load %arg8[%c0_28, %c0_29] : memref<1x32xf32, #tpu.memory_space<vmem>>, vector<1x32xf32>
    %55 = vector.broadcast %54 : vector<1x32xf32> to vector<2x32xf32>
    %56 = arith.addf %53, %55 : vector<2x32xf32>
    %c0_30 = arith.constant 0 : index
    %c0_31 = arith.constant 0 : index
    %c0_32 = arith.constant 0 : index
    %57 = vector.load %arg1[%c0_30, %c0_31, %c0_32] : memref<2x32x256xf32, #tpu.memory_space<vmem>>, vector<2x32x256xf32>
    %58 = vector.shape_cast %56 : vector<2x32xf32> to vector<2x32x1xf32>
    %59 = vector.broadcast %58 : vector<2x32x1xf32> to vector<2x32x256xf32>
    %60 = arith.addf %57, %59 : vector<2x32x256xf32>
    %c0_33 = arith.constant 0 : index
    %c0_34 = arith.constant 0 : index
    %c0_35 = arith.constant 0 : index
    %61 = vector.load %arg9[%c0_33, %c0_34, %c0_35] : memref<2x32x256xf32, #tpu.memory_space<vmem>>, vector<2x32x256xf32>
    tpu.vector_store %arg9[%c0_33, %c0_34, %c0_35], %60 {strides = array<i32>} : memref<2x32x256xf32, #tpu.memory_space<vmem>>, vector<2x32x256xf32>,
    return
  }
  func.func @transform_0(%arg0: i32) -> (i32, i32, i32) {
    %c0_i32 = arith.constant 0 : i32
    %c0_i32_0 = arith.constant 0 : i32
    %c0_i32_1 = arith.constant 0 : i32
    return %arg0, %c0_i32, %c0_i32_0 : i32, i32, i32
  }
  func.func @transform_1(%arg0: i32) -> (i32, i32) {
    %c0_i32 = arith.constant 0 : i32
    %c0_i32_0 = arith.constant 0 : i32
    %c0_i32_1 = arith.constant 0 : i32
    return %c0_i32, %c0_i32_0 : i32, i32
  }
  func.func @transform_2(%arg0: i32) -> (i32, i32) {
    %c0_i32 = arith.constant 0 : i32
    %c0_i32_0 = arith.constant 0 : i32
    %c0_i32_1 = arith.constant 0 : i32
    return %c0_i32, %c0_i32_0 : i32, i32
  }
  func.func @transform_3(%arg0: i32) -> (i32, i32) {
    %c0_i32 = arith.constant 0 : i32
    %c0_i32_0 = arith.constant 0 : i32
    %c0_i32_1 = arith.constant 0 : i32
    return %c0_i32, %c0_i32_0 : i32, i32
  }
  func.func @transform_4(%arg0: i32) -> (i32, i32) {
    %c0_i32 = arith.constant 0 : i32
    %c0_i32_0 = arith.constant 0 : i32
    %c0_i32_1 = arith.constant 0 : i32
    return %c0_i32, %c0_i32_0 : i32, i32
  }
  func.func @transform_5(%arg0: i32) -> (i32, i32) {
    %c0_i32 = arith.constant 0 : i32
    %c0_i32_0 = arith.constant 0 : i32
    %c0_i32_1 = arith.constant 0 : i32
    return %c0_i32, %c0_i32_0 : i32, i32
  }
  func.func @transform_6(%arg0: i32) -> (i32, i32) {
    %c0_i32 = arith.constant 0 : i32
    %c0_i32_0 = arith.constant 0 : i32
    %c0_i32_1 = arith.constant 0 : i32
    return %c0_i32, %c0_i32_0 : i32, i32
  }
  func.func @transform_7(%arg0: i32) -> (i32, i32) {
    %c0_i32 = arith.constant 0 : i32
    %c0_i32_0 = arith.constant 0 : i32
    %c0_i32_1 = arith.constant 0 : i32
    return %c0_i32, %c0_i32_0 : i32, i32
  }
  func.func @transform_8(%arg0: i32) -> (i32, i32, i32) {
    %c0_i32 = arith.constant 0 : i32
    %c0_i32_0 = arith.constant 0 : i32
    %c0_i32_1 = arith.constant 0 : i32
    return %arg0, %c0_i32, %c0_i32_0 : i32, i32, i32
  }
}

</mosaic_0001>

<bundles_post_ra>
// kernel: context_block.1
= control target key start
LH: loop header
LB: loop body
LE: loop exit
PB: predicated region body
PF: predicated region fallthrough
CT: control target
= control target key end

     0   :  { %13 = vsyncpa [#allocation3], 0  ;;  %s1435_s0 = inlined_call_operand.hbm [shape: f32[2,32,256], index: 0, kind: input, shape index: {}]   ;;  %s1436_s1 = inlined_call_operand.hbm [shape: f32[1,32], index: 1, kind: input, shape index: {}]   ;;  %s1437_s2 = inlined_call_operand.hbm [shape: f32[8,32], index: 2, kind: input, shape index: {}]   ;;  %s1438_s3 = inlined_call_operand.hbm [shape: f32[1,8], index: 3, kind: input, shape index: {}]   ;;  %s1439_s4 = inlined_call_operand.hbm [shape: f32[1,8], index: 4, kind: input, shape index: {}]   ;;  %s1440_s5 = inlined_call_operand.hbm [shape: f32[1,8], index: 5, kind: input, shape index: {}]   ;;  %s1441_s6 = inlined_call_operand.hbm [shape: f32[32,8], index: 6, kind: input, shape index: {}]   ;;  %s1442_s7 = inlined_call_operand.hbm [shape: f32[1,32], index: 7, kind: input, shape index: {}]   ;;  %s1443_s8 = inlined_call_operand.hbm [shape: f32[2,32,256], index: 8, kind: output, shape index: {}]  }
   0x1   :  { %14 = vsyncpa [#allocation6], 0 }
   0x2   :  { %15 = vsyncpa [#allocation9], 0 }
   0x3   :  { %16 = vsyncpa [#allocation12], 0 }
   0x4   :  { %17 = vsyncpa [#allocation15], 0 }
   0x5   :  { %18 = vsyncpa [#allocation4], 0  ;;  %s1129_s27 = smov [#allocation5]   ;;  %s1130_s29 = smov [#allocation8]  }
   0x6   :  { %s37_s28 = sshll.u32 %s1129_s27, 4  ;;  %s57_s30 = sshll.u32 %s1130_s29, 4  ;;  %s38_s28 = int_to_ptr.vmem [resolvable:$true] %s37_s28  ;;  %s58_s30 = int_to_ptr.vmem [resolvable:$true] %s57_s30 }
   0x7   :  { %s919_s11 = scalar_lea.hbm %s1436_s1, 16 }
   0x8   :  { %p920_p0 = scmp.ne.s32.totalorder %s1436_s1, %s919_s11  ;;  %p923_p1 = scmp.lt.u32.totalorder %s919_s11, %s1436_s1 }
   0xa   :  { %p925_p2 = pnand %p923_p1, %p920_p0 }
   0xc   :  { %928 = shalt.err (!%p925_p2)
}
   0xd   :  { %s929_s16 = scalar_lea.vmem %s38_s28, 16  ;;  %s933_s17 = scalar_lea.vmem %s38_s28, 32 }
   0xe   :  { %p930_p3 = scmp.ne.s32.totalorder %s38_s28, %s929_s16  ;;  %p934_p4 = scmp.lt.s32.totalorder %s38_s28, %s38_s28 }
   0xf   :  { %p935_p5 = scmp.lt.s32.totalorder %s933_s17, %s929_s16 }
  0x11   :  { %p936_p6 = por %p935_p5, %p934_p4 }
  0x13   :  { %p937_p7 = pnand %p936_p6, %p930_p3 }
  0x15   :  { %940 = shalt.err (!%p937_p7)
}
  0x16   :  { %40 = dma.hbm_to_vmem [thread:$0]  %s1436_s1, 16, %s38_s28, [#allocation6]  }
  0x17   :  { %s941_s22 = scalar_lea.hbm %s1438_s3, 16 }
  0x18   :  { %p942_p8 = scmp.ne.s32.totalorder %s1438_s3, %s941_s22  ;;  %p945_p9 = scmp.lt.u32.totalorder %s941_s22, %s1438_s3 }
  0x1a   :  { %p947_p10 = pnand %p945_p9, %p942_p8 }
  0x1c   :  { %950 = shalt.err (!%p947_p10)
}
  0x1d   :  { %s951_s27 = scalar_lea.vmem %s58_s30, 16  ;;  %s955_s29 = scalar_lea.vmem %s58_s30, 32 }
  0x1e   :  { %p952_p11 = scmp.ne.s32.totalorder %s58_s30, %s951_s27  ;;  %p956_p12 = scmp.lt.s32.totalorder %s58_s30, %s58_s30 }
  0x1f   :  { %p957_p13 = scmp.lt.s32.totalorder %s955_s29, %s951_s27 }
  0x21   :  { %p958_p0 = por %p957_p13, %p956_p12 }
  0x23   :  { %p959_p1 = pnand %p958_p0, %p952_p11 }
  0x25   :  { %962 = shalt.err (!%p959_p1)
}
  0x26   :  { %60 = dma.hbm_to_vmem [thread:$0]  %s1438_s3, 16, %s58_s30, [#allocation9]  }
  0x27   :  { %s1131_s9 = smov [#allocation11]   ;;  %s1132_s11 = smov [#allocation2]  }
  0x28   :  { %s77_s10 = sshll.u32 %s1131_s9, 4  ;;  %s24_s12 = sshll.u32 %s1132_s11, 4  ;;  %s78_s10 = int_to_ptr.vmem [resolvable:$true] %s77_s10  ;;  %s1215_s12 = int_to_ptr.vmem [resolvable:$true] %s24_s12 }
  0x29   :  { %s963_s15 = scalar_lea.hbm %s1440_s5, 16 }
  0x2a   :  { %p964_p2 = scmp.ne.s32.totalorder %s1440_s5, %s963_s15  ;;  %p967_p3 = scmp.lt.u32.totalorder %s963_s15, %s1440_s5 }
  0x2c   :  { %p969_p4 = pnand %p967_p3, %p964_p2 }
  0x2e   :  { %972 = shalt.err (!%p969_p4)
}
  0x2f   :  { %s973_s3 = scalar_lea.vmem %s78_s10, 16  ;;  %s977_s30 = scalar_lea.vmem %s78_s10, 32 }
  0x30   :  { %p974_p5 = scmp.ne.s32.totalorder %s78_s10, %s973_s3  ;;  %p978_p6 = scmp.lt.s32.totalorder %s78_s10, %s78_s10 }
  0x31   :  { %p979_p7 = scmp.lt.s32.totalorder %s977_s30, %s973_s3 }
  0x33   :  { %p980_p8 = por %p979_p7, %p978_p6 }
  0x35   :  { %p981_p9 = pnand %p980_p8, %p974_p5 }
  0x37   :  { %984 = shalt.err (!%p981_p9)
}
  0x38   :  { %80 = dma.hbm_to_vmem [thread:$0]  %s1440_s5, 16, %s78_s10, [#allocation12]  }
  0x39   :  { %s985_s24 = scalar_lea.hbm %s1435_s0, 2048 }
  0x3a   :  { %p986_p10 = scmp.ne.s32.totalorder %s1435_s0, %s985_s24  ;;  %p989_p11 = scmp.lt.u32.totalorder %s985_s24, %s1435_s0 }
  0x3c   :  { %p991_p12 = pnand %p989_p11, %p986_p10 }
  0x3e   :  { %994 = shalt.err (!%p991_p12)
}
  0x3f   :  { %s995_s1 = scalar_lea.vmem %s1215_s12, 2048  ;;  %p1000_p0 = scmp.lt.s32.totalorder %s1215_s12, %s1215_s12 }
  0x40   :  { %p996_p13 = scmp.ne.s32.totalorder %s1215_s12, %s995_s1  ;;  %p1001_p1 = scmp.lt.s32.totalorder %s995_s1, %s995_s1 }
  0x42   :  { %p1002_p2 = por %p1001_p1, %p1000_p0 }
  0x44   :  { %p1003_p3 = pnand %p1002_p2, %p996_p13 }
  0x46   :  { %1006 = shalt.err (!%p1003_p3)
}
  0x47   :  { %s1133_s5 = smov 256   ;;  %s1134_s28 = smov 16  }
  0x48   :  { %30 = dma.hbm_to_vmem [thread:$0]  %s1435_s0, 2048, %s1215_s12, [#allocation3], %s1133_s5, %s1133_s5, %s1134_s28  }
  0x49   :  { %s1135_s11 = smov [#allocation7]   ;;  %s1136_s14 = smov [#allocation10]  }
  0x4a   :  { %s47_s13 = sshll.u32 %s1135_s11, 4  ;;  %s67_s15 = sshll.u32 %s1136_s14, 4  ;;  %s48_s13 = int_to_ptr.vmem [resolvable:$true] %s47_s13  ;;  %s68_s15 = int_to_ptr.vmem [resolvable:$true] %s67_s15 }
  0x4b   :  { %s1007_s18 = scalar_lea.hbm %s1437_s2, 128 }
  0x4c   :  { %p1008_p4 = scmp.ne.s32.totalorder %s1437_s2, %s1007_s18  ;;  %p1011_p5 = scmp.lt.u32.totalorder %s1007_s18, %s1437_s2 }
  0x4e   :  { %p1013_p6 = pnand %p1011_p5, %p1008_p4 }
  0x50   :  { %1016 = shalt.err (!%p1013_p6)
}
  0x51   :  { %s1017_s0 = scalar_lea.vmem %s48_s13, 128  ;;  %p1022_p8 = scmp.lt.s32.totalorder %s48_s13, %s48_s13 }
  0x52   :  { %p1018_p7 = scmp.ne.s32.totalorder %s48_s13, %s1017_s0  ;;  %p1023_p9 = scmp.lt.s32.totalorder %s1017_s0, %s1017_s0 }
  0x54   :  { %p1024_p10 = por %p1023_p9, %p1022_p8 }
  0x56   :  { %p1025_p11 = pnand %p1024_p10, %p1018_p7 }
  0x58   :  { %1028 = shalt.err (!%p1025_p11)
}
  0x59   :  { %50 = dma.hbm_to_vmem [thread:$0]  %s1437_s2, 128, %s48_s13, [#allocation6]  }
  0x5a   :  { %s1029_s24 = scalar_lea.hbm %s1439_s4, 16 }
  0x5b   :  { %p1030_p12 = scmp.ne.s32.totalorder %s1439_s4, %s1029_s24  ;;  %p1033_p13 = scmp.lt.u32.totalorder %s1029_s24, %s1439_s4 }
  0x5d   :  { %p1035_p0 = pnand %p1033_p13, %p1030_p12 }
  0x5f   :  { %1038 = shalt.err (!%p1035_p0)
}
  0x60   :  { %s1039_s1 = scalar_lea.vmem %s68_s15, 16  ;;  %s1043_s9 = scalar_lea.vmem %s68_s15, 32 }
  0x61   :  { %p1040_p1 = scmp.ne.s32.totalorder %s68_s15, %s1039_s1  ;;  %p1044_p2 = scmp.lt.s32.totalorder %s68_s15, %s68_s15 }
  0x62   :  { %p1045_p3 = scmp.lt.s32.totalorder %s1043_s9, %s1039_s1 }
  0x64   :  { %p1046_p4 = por %p1045_p3, %p1044_p2 }
  0x66   :  { %p1047_p5 = pnand %p1046_p4, %p1040_p1 }
  0x68   :  { %1050 = shalt.err (!%p1047_p5)
}
  0x69   :  { %70 = dma.hbm_to_vmem [thread:$0]  %s1439_s4, 16, %s68_s15, [#allocation9]  }
  0x6a   :  { %s1137_s11 = smov [#allocation13]   ;;  %s1051_s17 = scalar_lea.hbm %s1441_s6, 512 }
  0x6b   :  { %s86_s13 = sshll.u32 %s1137_s11, 4  ;;  %p1052_p6 = scmp.ne.s32.totalorder %s1441_s6, %s1051_s17  ;;  %s87_s13 = int_to_ptr.vmem [resolvable:$true] %s86_s13 }
  0x6c   :  { %p1055_p7 = scmp.lt.u32.totalorder %s1051_s17, %s1441_s6 }
  0x6e   :  { %p1057_p8 = pnand %p1055_p7, %p1052_p6 }
  0x70   :  { %1060 = shalt.err (!%p1057_p8)
}
  0x71   :  { %s1061_s20 = scalar_lea.vmem %s87_s13, 512  ;;  %p1066_p10 = scmp.lt.s32.totalorder %s87_s13, %s87_s13 }
  0x72   :  { %p1062_p9 = scmp.ne.s32.totalorder %s87_s13, %s1061_s20  ;;  %p1067_p11 = scmp.lt.s32.totalorder %s1061_s20, %s1061_s20 }
  0x74   :  { %p1068_p12 = por %p1067_p11, %p1066_p10 }
  0x76   :  { %p1069_p13 = pnand %p1068_p12, %p1062_p9 }
  0x78   :  { %1072 = shalt.err (!%p1069_p13)
}
  0x79   :  { %s1138_s4 = smov 128   ;;  %s1139_s15 = smov 8  }
  0x7a   :  { %92 = dma.hbm_to_vmem [thread:$0]  %s1441_s6, 512, %s87_s13, [#allocation12], %s1138_s4, %s1138_s4, %s1139_s15  }
  0x7b   :  { %s1140_s21 = smov [#allocation14]   ;;  %s1073_s25 = scalar_lea.hbm %s1442_s7, 16 }
  0x7c   :  { %s99_s22 = sshll.u32 %s1140_s21, 4  ;;  %p1074_p0 = scmp.ne.s32.totalorder %s1442_s7, %s1073_s25  ;;  %s100_s22 = int_to_ptr.vmem [resolvable:$true] %s99_s22 }
  0x7d   :  { %p1077_p1 = scmp.lt.u32.totalorder %s1073_s25, %s1442_s7 }
  0x7f   :  { %p1079_p2 = pnand %p1077_p1, %p1074_p0 }
  0x81   :  { %1082 = shalt.err (!%p1079_p2)
}
  0x82   :  { %s1083_s9 = scalar_lea.vmem %s100_s22, 16  ;;  %s1087_s6 = scalar_lea.vmem %s100_s22, 32 }
  0x83   :  { %p1084_p3 = scmp.ne.s32.totalorder %s100_s22, %s1083_s9  ;;  %p1088_p4 = scmp.lt.s32.totalorder %s100_s22, %s100_s22 }
  0x84   :  { %p1089_p5 = scmp.lt.s32.totalorder %s1087_s6, %s1083_s9 }
  0x86   :  { %p1090_p6 = por %p1089_p5, %p1088_p4 }
  0x88   :  { %p1091_p7 = pnand %p1090_p6, %p1084_p3 }
  0x8a   :  { %1094 = shalt.err (!%p1091_p7)
}
  0x8b   :  { %102 = dma.hbm_to_vmem [thread:$0]  %s1442_s7, 16, %s100_s22, [#allocation15]  }
  0x8c   :  { %1117 = dma.done.wait [#allocation3], 2048  }
  0x8d   :  { %1118 = vsyncadd [#allocation3], 4294965248 }
  0x8e   :  { %1119 = dma.done.wait [#allocation6], 144  }
  0x8f   :  { %1120 = vsyncadd [#allocation6], 4294967152 }
  0x90   :  { %1121 = dma.done.wait [#allocation9], 32  }
  0x91   :  { %1122 = vsyncadd [#allocation9], 4294967264 }
  0x92   :  { %1123 = dma.done.wait [#allocation12], 528  }
  0x93   :  { %1124 = vsyncadd [#allocation12], 4294966768 }
  0x94   :  { %1125 = dma.done.wait [#allocation15], 16  }
  0x95   :  { %1126 = vsyncadd [#allocation15], 4294967280  ;;  %v1141_v0 = vmov 0.0   ;;  %v1298_v1 = vld [vmem:[#allocation2 + $0x8] sm:$0xff]  ;;  %v1300_v2 = vld [vmem:[#allocation2 + $0x18] sm:$0xff]  ;;  %vm144_vm0 = vcmask 261120   ;;  %v355_v45 = vlaneseq }
  0x96   :  { %212 = vmatprep.mubr.f32.mxu0 %v1141_v0  ;;  %v1302_v3 = vld [vmem:[#allocation2] sm:$0xff]  ;;  %v864_v4 = vpack.c.bf16 %v1300_v2, %v1298_v1  ;;  %v1306_v5 = vld [vmem:[#allocation2 + $0x10] sm:$0xff]  ;;  %v1308_v6 = vld [vmem:[#allocation2 + $0x28] sm:$0xff]  ;;  %vm295_vm1 = vcmask 1041409   ;;  %vm301_vm2 = vcmask 1041408   ;;  %vm1143_vm3 = vmmov 0  }
  0x97   :  { %v1310_v7 = vld [vmem:[#allocation2 + $0x38] sm:$0xff]  ;;  %v866_v8 = vpack.c.bf16 %v1306_v5, %v1302_v3  ;;  %v1316_v10 = vld [vmem:[#allocation2 + $0x20] sm:$0xff]  ;;  %v1318_v11 = vld [vmem:[#allocation2 + $0x30] sm:$0xff]  ;;  %v1355_v48 = vshrl.u32 %v355_v45, 7  ;;  %861 = vmatprep.mubr.msk.f32.mxu1 %vm1143_vm3, %v1141_v0  ;;  %vm481_vm4 = vcmask 130112   ;;  %vm488_vm5 = vcmask 195712  }
  0x98   :  { %v868_v9 = vpack.c.bf16 %v1310_v7, %v1308_v6  ;;  %865 = vmatprep.subr.bf16.mxu0 %v864_v4  ;;  %v1320_v12 = vld [vmem:[#allocation2 + $0x48] sm:$0xff]  ;;  %v1322_v13 = vld [vmem:[#allocation2 + $0x58] sm:$0xff]  ;;  %v870_v14 = vpack.c.bf16 %v1318_v11, %v1316_v10  ;;  %v1328_v16 = vld [vmem:[#allocation2 + $0x40] sm:$0xff]  ;;  %vm495_vm6 = vcmask 261312   ;;  %vm592_vm7 = vcmask 58368   ;;  %s1145_s7 = smov [#allocation16]  }
  0x99   :  { %867 = vmatpush1.bf16.msra.mxu0 %v866_v8  ;;  %v872_v15 = vpack.c.bf16 %v1322_v13, %v1320_v12  ;;  %v1330_v17 = vld [vmem:[#allocation2 + $0x50] sm:$0xff]  ;;  %v1332_v18 = vld [vmem:[#allocation2 + $0x68] sm:$0xff]  ;;  %v1334_v19 = vld [vmem:[#allocation2 + $0x78] sm:$0xff]  ;;  %v1358_v49 = vsub.s32 0, %v1355_v48  ;;  %vm635_vm8 = vcmask 64512   ;;  %s812_s11 = sshll.u32 %s1145_s7, 4  ;;  %s813_s11 = int_to_ptr.vmem [resolvable:$true] %s812_s11 }
  0x9a   :  { %869 = vmatprep.subr.bf16.mxu0 %v868_v9  ;;  %v127_v20 = vld [vmem:[#allocation5] sm:$0x1]  ;;  %v874_v21 = vpack.c.bf16 %v1330_v17, %v1328_v16  ;;  %v876_v22 = vpack.c.bf16 %v1334_v19, %v1332_v18  ;;  %v1342_v24 = vld [vmem:[#allocation2 + $0x70] sm:$0xff]  ;;  %vm882_vm9 = vmpackc.low %vm635_vm8, %vm635_vm8  ;;  %s1095_s13 = scalar_lea.vmem %s813_s11, 2048  ;;  %p1100_p9 = scmp.lt.s32.totalorder %s813_s11, %s813_s11 }
  0x9b   :  { %v1340_v23 = vld [vmem:[#allocation2 + $0x60] sm:$0xff]  ;;  %p1096_p8 = scmp.ne.s32.totalorder %s813_s11, %s1095_s13  ;;  %p1101_p10 = scmp.lt.s32.totalorder %s1095_s13, %s1095_s13 }
  0x9c   :  { %v878_v25 = vpack.c.bf16 %v1342_v24, %v1340_v23 }
  0x9d   :  { %871 = vmatpush1.bf16.msra.mxu0 %v870_v14  ;;  %p1102_p11 = por %p1101_p10, %p1100_p9 }
  0x9e   :  { %873 = vmatprep.subr.bf16.mxu0 %v872_v15 }
  0x9f   :  { %p1103_p12 = pnand %p1102_p11, %p1096_p8 }
  0xa0   :  { %828 = vmatmul.mubr.msk.f32.vlgmr.msra.gmra.mrb[0].mxu0 %vm144_vm0, %v127_v20 }
  0xa1   :  { %875 = vmatpush1.bf16.msra.mxu0 %v874_v21  ;;  %283 = vmatprep.mubr.f32.mxu0 %v1141_v0 }
  0xa2   :  { %877 = vmatprep.subr.bf16.mxu0 %v876_v22 }
  0xa5   :  { %879 = vmatpush1.bf16.msra.mxu0 %v878_v25 }
  0xa6   :  { %848 = vmatprep.subr.mxu0 %v1141_v0 }
  0xa8   :  { %829 = vmatmul.mubr.msk.f32.vlgmr.msra.gmra.mrb[2].mxu0 %vm144_vm0, %v127_v20 }
  0xa9   :  { %850 = vmatprep.mubr.msk.f32.mxu0 %vm1143_vm3, %v1141_v0 }
 0x173   :  { %v214_v26 = vpop.f32.mrb[0].mxu0 }
 0x174   :  { %v216_v27 = vpop.f32.mrb[1].mxu0 }
 0x17b   :  { %v285_v28 = vpop.f32.mrb[2].mxu0 }
 0x17c   :  { %v294_v29 = vrot.slane %v285_v28, 7  ;;  %v287_v30 = vpop.f32.mrb[3].mxu0 }
 0x17d   :  { %v297_v31 = vrot.slane %v287_v30, 7 }
 0x17e   :  { %v296_v32 = vsel %vm295_vm1, %v294_v29, %v214_v26 }
 0x17f   :  { %v298_v33 = vsel %vm295_vm1, %v297_v31, %v216_v27  ;;  %v302_v34 = vsel %vm301_vm2, %v296_v32, -inf }
 0x180   :  { %v303_v35 = vsel %vm301_vm2, %v298_v33, -inf }
 0x181   :  { %v304_v36 = vmax.f32 %v302_v34, %v303_v35 }
 0x183   :  { %305 = vmax.xlane.f32.xlu0 %v304_v36 }
 0x210   :  { %v306_v37 = vpop.xlane.xlu0 %305 }
 0x211   :  { %v308_v38 = vrot.slane %v306_v37, 1  ;;  %v311_v39 = vsub.f32 %v214_v26, %v306_v37  ;;  %v312_v40 = vsub.f32 %v216_v27, %v306_v37 }
 0x213   :  { %v313_v41 = vsub.f32 %v285_v28, %v308_v38  ;;  %v314_v42 = vsub.f32 %v287_v30, %v308_v38  ;;  %v315_v43 = vmul.f32 1.442695, %v311_v39  ;;  %v317_v44 = vmul.f32 1.442695, %v312_v40 }
 0x215   :  { %907 = vpow2.f32 %v315_v43  ;;  %v319_v46 = vmul.f32 1.442695, %v313_v41  ;;  %v321_v47 = vmul.f32 1.442695, %v314_v42  ;;  %v1142_v42 = vmov 0  }
 0x216   :  { %909 = vpow2.f32 %v317_v44  ;;  %906 = vset.pattern.permute.xlu1 %v1142_v42  ;;  %905 = vset.pattern.permute.xlu0 %v1142_v42 }
 0x217   :  { %911 = vpow2.f32 %v319_v46  ;;  %v418_v46 = vsub.s32 1, %v1355_v48 }
 0x218   :  { %913 = vpow2.f32 %v321_v47 }
 0x21f   :  { %v908_v50 = vpop.eup %907 }
 0x220   :  { %v910_v51 = vpop.eup %909  ;;  %v358_v52 = vrot.slane %v908_v50, %v1358_v49 }
 0x221   :  { %v912_v53 = vpop.eup %911  ;;  %v362_v54 = vrot.slane %v910_v51, %v1358_v49 }
 0x222   :  { %v914_v55 = vpop.eup %913  ;;  %v363_v56 = vmul.f32 %v358_v52, %v1302_v3  ;;  %v327_v57 = vrot.slane %v912_v53, 7  ;;  %v365_v58 = vmul.f32 %v358_v52, %v1306_v5  ;;  %v367_v59 = vmul.f32 %v358_v52, %v1316_v10 }
 0x223   :  { %v364_v60 = vmul.f32 %v362_v54, %v1298_v1  ;;  %v329_v61 = vrot.slane %v914_v55, 7  ;;  %v366_v62 = vmul.f32 %v362_v54, %v1300_v2  ;;  %v368_v63 = vmul.f32 %v362_v54, %v1308_v6 }
 0x224   :  { %v328_v4 = vsel %vm295_vm1, %v327_v57, %v908_v50  ;;  %v386_v8 = vrot.slane %v912_v53, %v1358_v49  ;;  %v390_v9 = vrot.slane %v914_v55, %v1358_v49  ;;  %v369_v14 = vmul.f32 %v358_v52, %v1318_v11 }
 0x225   :  { %v371_v15 = vadd.f32 %v364_v60, %v363_v56  ;;  %v330_v20 = vsel %vm295_vm1, %v329_v61, %v910_v51  ;;  %v333_v21 = vsel %vm301_vm2, %v328_v4, 0.0  ;;  %v374_v22 = vadd.f32 %v366_v62, %v365_v58 }
 0x226   :  { %v334_v25 = vsel %vm301_vm2, %v330_v20, 0.0  ;;  %v377_v26 = vadd.f32 %v368_v63, %v367_v59  ;;  %v393_v27 = vmul.f32 %v386_v8, %v1330_v17  ;;  %v394_v28 = vmul.f32 %v390_v9, %v1322_v13 }
 0x227   :  { %372 = vadd.xlane.f32.xlu1 %v371_v15  ;;  %v335_v29 = vadd.f32 %v334_v25, %v333_v21  ;;  %v391_v30 = vmul.f32 %v386_v8, %v1328_v16  ;;  %v392_v31 = vmul.f32 %v390_v9, %v1320_v12  ;;  %v395_v32 = vmul.f32 %v386_v8, %v1340_v23 }
 0x228   :  { %v402_v33 = vadd.f32 %v394_v28, %v393_v27  ;;  %v396_v34 = vmul.f32 %v390_v9, %v1332_v18  ;;  %v370_v35 = vmul.f32 %v362_v54, %v1310_v7  ;;  %v397_v36 = vmul.f32 %v386_v8, %v1342_v24 }
 0x229   :  { %336 = vadd.xlane.f32.xlu0 %v335_v29  ;;  %v399_v37 = vadd.f32 %v392_v31, %v391_v30  ;;  %v398_v38 = vmul.f32 %v390_v9, %v1334_v19 }
 0x22a   :  { %v405_v39 = vadd.f32 %v396_v34, %v395_v32  ;;  %v380_v40 = vadd.f32 %v370_v35, %v369_v14  ;;  %v430_v14 = vld [vmem:[#allocation7] sm:$0xff] }
 0x22b   :  { %375 = vadd.xlane.f32.xlu1 %v374_v22  ;;  %v408_v41 = vadd.f32 %v398_v38, %v397_v36  ;;  %849 = vmatpush3.xpose.msk.msra.mxu0 %vm144_vm0, %v430_v14  ;;  %v471_v22 = vand.u32 127, %v355_v45 }
 0x22d   :  { %378 = vadd.xlane.f32.xlu0 %v377_v26  ;;  %v476_v26 = vadd.s32 4294967288, %v471_v22  ;;  %v483_v27 = vadd.s32 4294967280, %v471_v22  ;;  %v490_v28 = vadd.s32 4294967272, %v471_v22  ;;  %v474_v31 = vsub.s32 %v471_v22, %v1355_v48 }
 0x22f   :  { %403 = vadd.xlane.f32.xlu1 %v402_v33  ;;  %v479_v30 = vsub.s32 %v476_v26, %v1355_v48  ;;  %v486_v33 = vsub.s32 %v483_v27, %v1355_v48  ;;  %v493_v34 = vsub.s32 %v490_v28, %v1355_v48  ;;  %v833_v28 = vld [vmem:[#allocation10] ss:$0 sm:$0xff] }
 0x231   :  { %400 = vadd.xlane.f32.xlu0 %v399_v37 }
 0x233   :  { %406 = vadd.xlane.f32.xlu1 %v405_v39 }
 0x235   :  { %381 = vadd.xlane.f32.xlu0 %v380_v40 }
 0x237   :  { %409 = vadd.xlane.f32.xlu1 %v408_v41 }
 0x2b4   :  { %v373_v44 = vpop.xlane.xlu1 %372 }
 0x2b6   :  { %v337_v43 = vpop.xlane.xlu0 %336 }
 0x2b7   :  { %915 = vrcp.f32 %v337_v43 }
 0x2b8   :  { %v376_v52 = vpop.xlane.xlu1 %375 }
 0x2ba   :  { %v379_v50 = vpop.xlane.xlu0 %378 }
 0x2bc   :  { %v404_v58 = vpop.xlane.xlu1 %403 }
 0x2be   :  { %v401_v56 = vpop.xlane.xlu0 %400 }
 0x2c0   :  { %v407_v61 = vpop.xlane.xlu1 %406 }
 0x2c1   :  { %v916_v47 = vpop.eup %915 }
 0x2c2   :  { %v415_v51 = vrot.slane %v916_v47, %v1358_v49  ;;  %v419_v54 = vrot.slane %v916_v47, %v418_v46  ;;  %v382_v63 = vpop.xlane.xlu0 %381 }
 0x2c4   :  { %v423_v53 = vmul.f32 %v415_v51, %v376_v52  ;;  %v422_v55 = vmul.f32 %v415_v51, %v373_v44  ;;  %v426_v57 = vmul.f32 %v419_v54, %v401_v56  ;;  %v427_v59 = vmul.f32 %v419_v54, %v404_v58  ;;  %v410_v8 = vpop.xlane.xlu1 %409 }
 0x2c5   :  { %v424_v60 = vmul.f32 %v415_v51, %v379_v50  ;;  %v428_v62 = vmul.f32 %v419_v54, %v407_v61  ;;  %v425_v4 = vmul.f32 %v415_v51, %v382_v63  ;;  %v429_v9 = vmul.f32 %v419_v54, %v410_v8  ;;  %v830_v54 = vld [vmem:[#allocation8] ss:$0 sm:$0xff]  ;;  %v625_v8 = vld [vmem:[#allocation13 + $0x8] sm:$0xff] }
 0x2c6   :  { %450 = vperm.xlu1 %906, %v423_v53   ;;  %447 = vperm.xlu0 %905, %v422_v55  }
 0x2ca   :  { %459 = vperm.xlu1 %906, %v426_v57  }
 0x2ce   :  { %462 = vperm.xlu1 %906, %v427_v59  }
 0x2d2   :  { %453 = vperm.xlu1 %906, %v424_v60  }
 0x2d6   :  { %465 = vperm.xlu1 %906, %v428_v62  }
 0x2da   :  { %456 = vperm.xlu1 %906, %v425_v4   ;;  %v624_v4 = vld [vmem:[#allocation13] sm:$0xff] }
 0x2db   :  { %v881_v14 = vpack.c.bf16 %v625_v8, %v624_v4 }
 0x2de   :  { %468 = vperm.xlu1 %906, %v429_v9   ;;  %v1144_v9 = vmov 0.0|0.0  }
 0x2df   :  { %880 = vmatprep.subr.bf16.mxu1 %v1144_v9 }
 0x2e0   :  { %883 = vmatpush3.bf16.xpose.msk.msra.mxu1 %vm882_vm9, %v881_v14 }
 0x2e1   :  { %884 = vmatprep.subr.bf16.mxu1 %v1144_v9 }
 0x345   :  { %v451_v15 = vpop.permute.xlu1 %450  ;;  %v448_v32 = vpop.permute.xlu0 %447 }
 0x346   :  { %v480_v35 = vrot.slane %v451_v15, %v479_v30  ;;  %v475_v36 = vrot.slane %v448_v32, %v474_v31  ;;  %v626_v15 = vld [vmem:[#allocation13 + $0x10] sm:$0xff] }
 0x348   :  { %v482_v42 = vsel %vm481_vm4, %v480_v35, %v475_v36 }
 0x349   :  { %v460_v20 = vpop.permute.xlu1 %459 }
 0x34a   :  { %v500_v39 = vrot.slane %v460_v20, %v474_v31  ;;  %v627_v20 = vld [vmem:[#allocation13 + $0x18] sm:$0xff] }
 0x34d   :  { %v463_v21 = vpop.permute.xlu1 %462 }
 0x34e   :  { %v504_v37 = vrot.slane %v463_v21, %v479_v30  ;;  %v885_v21 = vpack.c.bf16 %v627_v20, %v626_v15  ;;  %v834_v30 = vld [vmem:[#allocation11] ss:$0 sm:$0xff] }
 0x350   :  { %v505_v43 = vsel %vm481_vm4, %v504_v37, %v500_v39  ;;  %887 = vmatpush3.bf16.xpose.msk.msra.mxu1 %vm882_vm9, %v885_v21 }
 0x351   :  { %v454_v25 = vpop.permute.xlu1 %453 }
 0x352   :  { %v487_v45 = vrot.slane %v454_v25, %v486_v33 }
 0x354   :  { %v489_v47 = vsel %vm488_vm5, %v487_v45, %v482_v42 }
 0x355   :  { %v466_v29 = vpop.permute.xlu1 %465 }
 0x356   :  { %v509_v38 = vrot.slane %v466_v29, %v486_v33 }
 0x358   :  { %v510_v50 = vsel %vm488_vm5, %v509_v38, %v505_v43 }
 0x359   :  { %v457_v0 = vpop.permute.xlu1 %456 }
 0x35a   :  { %v494_v40 = vrot.slane %v457_v0, %v493_v34 }
 0x35c   :  { %v496_v51 = vsel %vm495_vm6, %v494_v40, %v489_v47 }
 0x35d   :  { %v469_v41 = vpop.permute.xlu1 %468 }
 0x35e   :  { %v514_v44 = vrot.slane %v469_v41, %v493_v34  ;;  %v835_v34 = vld [vmem:[#allocation14] ss:$0 sm:$0xff] }
 0x360   :  { %v515_v52 = vsel %vm495_vm6, %v514_v44, %v510_v50 }
 0x361   :  { %v516_v53 = vsel %vm295_vm1, %v515_v52, %v496_v51 }
 0x362   :  { %851 = vmatmul.mubr.msk.f32.vlgmr.msra.gmra.mrb[4].mxu0 %vm144_vm0, %v516_v53 }
 0x435   :  { %v588_v55 = vpop.f32.mrb[4].mxu0 }
 0x436   :  { %v589_v56 = vadd.f32 %v830_v54, %v588_v55  ;;  %v852_v57 = vpop.f32.mrb[5].mxu0 }
 0x438   :  { %v593_v58 = vsel %vm592_vm7, %v589_v56, 0.0 }
 0x439   :  { %594 = vadd.xlane.f32.xlu1 %v593_v58 }
 0x4c6   :  { %v595_v59 = vpop.xlane.xlu1 %594 }
 0x4c7   :  { %v597_v60 = vmul.f32 0.125, %v595_v59 }
 0x4c9   :  { %v598_v61 = vsub.f32 %v589_v56, %v597_v60 }
 0x4cb   :  { %v599_v62 = vmul.f32 %v598_v61, %v598_v61 }
 0x4cd   :  { %v600_v63 = vsel %vm592_vm7, %v599_v62, 0.0 }
 0x4ce   :  { %601 = vadd.xlane.f32.xlu0 %v600_v63 }
 0x55b   :  { %v602_v22 = vpop.xlane.xlu0 %601 }
 0x55c   :  { %v603_v25 = vmul.f32 0.125, %v602_v22 }
 0x55e   :  { %v604_v26 = vadd.f32 1e-05, %v603_v25 }
 0x560   :  { %917 = vrsqrt.f32 %v604_v26 }
 0x56a   :  { %v918_v27 = vpop.eup %917 }
 0x56b   :  { %v606_v29 = vmul.f32 %v918_v27, %v598_v61 }
 0x56d   :  { %v614_v31 = vmul.f32 %v833_v28, %v606_v29 }
 0x56f   :  { %v622_v32 = vadd.f32 %v834_v30, %v614_v31 }
 0x571   :  { %v623_v33 = vmax.f32 %v622_v32, 0.0 }
 0x573   :  { %862 = vmatmul.mubr.msk.f32.vlgmr.msra.gmra.mrb[0].mxu1 %vm635_vm8, %v623_v33 }
 0x646   :  { %v717_v0 = vpop.f32.mrb[0].mxu1 }
 0x647   :  { %v718_v35 = vadd.f32 %v835_v34, %v717_v0  ;;  %v863_v36 = vpop.f32.mrb[1].mxu1 }
 0x649   :  { %v740_v37 = vrot.slane %v718_v35, %v1358_v49  ;;  %v759_v45 = vrot.slane %v718_v35, %v418_v46 }
 0x64b   :  { %746 = vbcast.lane.b32.xlu1 %v740_v37, 264  ;;  %742 = vbcast.lane.b32.xlu0 %v740_v37, 256 }
 0x64f   :  { %750 = vbcast.lane.b32.xlu1 %v740_v37, 272  ;;  %754 = vbcast.lane.b32.xlu0 %v740_v37, 280 }
 0x653   :  { %761 = vbcast.lane.b32.xlu1 %v759_v45, 256  ;;  %765 = vbcast.lane.b32.xlu0 %v759_v45, 264 }
 0x657   :  { %769 = vbcast.lane.b32.xlu1 %v759_v45, 272  ;;  %773 = vbcast.lane.b32.xlu0 %v759_v45, 280 }
 0x6bd   :  { %v747_v38 = vpop.permute.xlu1 %746  ;;  %v743_v39 = vpop.permute.xlu0 %742 }
 0x6be   :  { %v777_v40 = vadd.f32 %v747_v38, %v1306_v5  ;;  %v778_v41 = vadd.f32 %v747_v38, %v1300_v2  ;;  %v775_v42 = vadd.f32 %v743_v39, %v1302_v3  ;;  %v776_v49 = vadd.f32 %v743_v39, %v1298_v1 }
 0x6c0   :  { %793 = vst [vmem:[#allocation16 + $0x10] sm:$0xff] %v777_v40  ;;  %794 = vst [vmem:[#allocation16 + $0x18] sm:$0xff] %v778_v41 }
 0x6c1   :  { %791 = vst [vmem:[#allocation16] sm:$0xff] %v775_v42  ;;  %792 = vst [vmem:[#allocation16 + $0x8] sm:$0xff] %v776_v49  ;;  %v751_v48 = vpop.permute.xlu1 %750  ;;  %v755_v46 = vpop.permute.xlu0 %754 }
 0x6c2   :  { %v779_v43 = vadd.f32 %v751_v48, %v1316_v10  ;;  %v780_v44 = vadd.f32 %v751_v48, %v1308_v6  ;;  %v781_v47 = vadd.f32 %v755_v46, %v1318_v11  ;;  %v782_v5 = vadd.f32 %v755_v46, %v1310_v7 }
 0x6c4   :  { %795 = vst [vmem:[#allocation16 + $0x20] sm:$0xff] %v779_v43  ;;  %796 = vst [vmem:[#allocation16 + $0x28] sm:$0xff] %v780_v44 }
 0x6c5   :  { %797 = vst [vmem:[#allocation16 + $0x30] sm:$0xff] %v781_v47  ;;  %798 = vst [vmem:[#allocation16 + $0x38] sm:$0xff] %v782_v5  ;;  %v762_v2 = vpop.permute.xlu1 %761  ;;  %v766_v1 = vpop.permute.xlu0 %765 }
 0x6c6   :  { %v783_v3 = vadd.f32 %v762_v2, %v1328_v16  ;;  %v784_v50 = vadd.f32 %v762_v2, %v1320_v12  ;;  %v785_v51 = vadd.f32 %v766_v1, %v1330_v17  ;;  %v786_v10 = vadd.f32 %v766_v1, %v1322_v13 }
 0x6c8   :  { %799 = vst [vmem:[#allocation16 + $0x40] sm:$0xff] %v783_v3  ;;  %800 = vst [vmem:[#allocation16 + $0x48] sm:$0xff] %v784_v50 }
 0x6c9   :  { %801 = vst [vmem:[#allocation16 + $0x50] sm:$0xff] %v785_v51  ;;  %802 = vst [vmem:[#allocation16 + $0x58] sm:$0xff] %v786_v10  ;;  %v770_v6 = vpop.permute.xlu1 %769  ;;  %v774_v7 = vpop.permute.xlu0 %773 }
 0x6ca   :  { %v787_v11 = vadd.f32 %v770_v6, %v1340_v23  ;;  %v788_v52 = vadd.f32 %v770_v6, %v1332_v18  ;;  %v789_v16 = vadd.f32 %v774_v7, %v1342_v24  ;;  %v790_v12 = vadd.f32 %v774_v7, %v1334_v19 }
 0x6cc   :  { %803 = vst [vmem:[#allocation16 + $0x60] sm:$0xff] %v787_v11  ;;  %804 = vst [vmem:[#allocation16 + $0x68] sm:$0xff] %v788_v52 }
 0x6cd   :  { %805 = vst [vmem:[#allocation16 + $0x70] sm:$0xff] %v789_v16  ;;  %806 = vst [vmem:[#allocation16 + $0x78] sm:$0xff] %v790_v12 }
 0x6ce   :  { %1106 = shalt.err (!%p1103_p12)
}
 0x6cf   :  { %s1107_s17 = scalar_lea.hbm %s1443_s8, 2048 }
 0x6d0   :  { %p1108_p13 = scmp.ne.s32.totalorder %s1443_s8, %s1107_s17  ;;  %p1111_p0 = scmp.lt.u32.totalorder %s1107_s17, %s1443_s8 }
 0x6d2   :  { %p1113_p1 = pnand %p1111_p0, %p1108_p13 }
 0x6d4   :  { %1116 = shalt.err (!%p1113_p1)
}
 0x6d5   :  { %818 = dma.vmem_to_hbm [thread:$0]  %s813_s11, 2048, %s1443_s8, [#allocation4], %s1133_s5, %s1133_s5, %s1134_s28  }
 0x6d6   :  { %1127 = dma.done.wait [#allocation4], 2048  }
 0x6d7   :  { %1128 = vsyncadd [#allocation4], 4294965248 }
 0x6d8   :  { %822 = vsyncpa [#allocation3], 1 }
 0x6d9   :  { %823 = vsyncpa [#allocation6], 1 }
 0x6da   :  { %824 = vsyncpa [#allocation9], 1 }
 0x6db   :  { %825 = vsyncpa [#allocation12], 1 }
 0x6dc   :  { %826 = vsyncpa [#allocation15], 1 }
 0x6dd   :  { %827 = vsyncpa [#allocation4], 1 }

</bundles_post_ra>
